<compile_context>
chip_gen: v5e
topology: v5e:2x2
jax: 0.10.0
libtpu: 0.0.40
codegen_flags: <defaults>
</compile_context>

<pallas_src>
import functools

import jax
import jax.numpy as jnp
from jax.experimental import pallas as pl
from jax.experimental.pallas import tpu as pltpu


def se_block_kernel(x_ref, w1t_ref, b1_ref, w2t_ref, b2_ref, out_ref, *, hw_true):
    x = x_ref[...]                                          # (1, C, HWp) f32

    # Global average pool over spatial dims (AdaptiveAvgPool2d(1)).
    # Padding lanes are zero, so sum is exact; divide by the true H*W.
    pooled = jnp.sum(x, axis=-1) * (1.0 / hw_true)          # (1, C)

    # Linear(f_in -> mid): weights pre-transposed in the wrapper -> (C, mid).
    h = jnp.dot(pooled, w1t_ref[...],
                preferred_element_type=jnp.float32) + b1_ref[...]
    # LeakyReLU(negative_slope=0.05) on the VPU.
    h = jnp.where(h > 0, h, 0.05 * h)

    # Linear(mid -> f_in): pre-transposed -> (mid, C), then Sigmoid.
    s = jnp.dot(h, w2t_ref[...],
                preferred_element_type=jnp.float32) + b2_ref[...]
    s = jax.nn.sigmoid(s)                                   # (1, C)

    # Channel-wise re-scaling of the input block.
    out_ref[...] = x * s[:, :, None]


def se_block(x, w1, b1, w2, b2):
    """x: (B, C, H, W) NCHW; w1: (mid, C); b1: (1, mid); w2: (C, mid); b2: (1, C)."""
    B, C, H, W = x.shape
    mid = w1.shape[0]
    HW = H * W
    HWp = ((HW + 127) // 128) * 128          # lane-dense (multiple of 128)

    x3 = x.reshape(B, C, HW)
    if HWp != HW:
        x3 = jnp.pad(x3, ((0, 0), (0, 0), (0, HWp - HW)))

    # Hoist the weight transposes out of the kernel (free layout plumbing).
    w1_t = w1.T                               # (C, mid)
    w2_t = w2.T                               # (mid, C)

    # VMEM budget: double-buffered input + output block + resident params,
    # with headroom; capped well under v7x's 64 MiB physical VMEM.
    block_bytes = C * HWp * x.dtype.itemsize
    vmem_limit = int(min(max(4 * block_bytes + (1 << 20), 16 * 1024 * 1024),
                         48 * 1024 * 1024))

    kernel = functools.partial(se_block_kernel, hw_true=float(HW))

    out = pl.pallas_call(
        kernel,
        out_shape=jax.ShapeDtypeStruct((B, C, HWp), x.dtype),
        grid=(B,),
        in_specs=[
            pl.BlockSpec((1, C, HWp), lambda b: (b, 0, 0)),   # x: one batch slab
            pl.BlockSpec((C, mid), lambda b: (0, 0)),         # w1_t: resident
            pl.BlockSpec((1, mid), lambda b: (0, 0)),         # b1:  resident
            pl.BlockSpec((mid, C), lambda b: (0, 0)),         # w2_t: resident
            pl.BlockSpec((1, C), lambda b: (0, 0)),           # b2:  resident
        ],
        out_specs=pl.BlockSpec((1, C, HWp), lambda b: (b, 0, 0)),
        compiler_params=pltpu.CompilerParams(
            dimension_semantics=("parallel",),                # megacore on v7x
            vmem_limit_bytes=vmem_limit,
        ),
    )(x3, w1_t, b1, w2_t, b2)

    out = out[:, :, :HW]
    return out.reshape(B, C, H, W)


def se_block_ref(x, w1, b1, w2, b2):
    """Pure-JAX reference matching the PyTorch module."""
    pooled = jnp.mean(x, axis=(2, 3))                       # (B, C)
    h = pooled @ w1.T + b1
    h = jnp.where(h > 0, h, 0.05 * h)
    s = jax.nn.sigmoid(h @ w2.T + b2)
    return x * s[:, :, None, None]


if __name__ == "__main__":
    B, C, H, W = 2, 4, 16, 16      # f_in = C = 4
    mid = 8                        # mid_ch

    key = jax.random.PRNGKey(0)
    kx, k1, k2, k3, k4 = jax.random.split(key, 5)

    x = jax.random.normal(kx, (B, C, H, W), dtype=jnp.float32)
    # Deterministic synthetic parameters (Linear(f_in, mid) and Linear(mid, f_in)).
    w1 = jax.random.normal(k1, (mid, C), dtype=jnp.float32) * 0.1
    b1 = jax.random.normal(k2, (1, mid), dtype=jnp.float32) * 0.1
    w2 = jax.random.normal(k3, (C, mid), dtype=jnp.float32) * 0.1
    b2 = jax.random.normal(k4, (1, C), dtype=jnp.float32) * 0.1

    out = jax.block_until_ready(se_block(x, w1, b1, w2, b2))
    ref = jax.block_until_ready(se_block_ref(x, w1, b1, w2, b2))

    assert out.shape == (B, C, H, W)
    assert jnp.allclose(out, ref, atol=1e-5, rtol=1e-5), "mismatch vs reference"
    print("KERNEL_OK")
</pallas_src>

<mosaic_0001>
module attributes {stable_mosaic.version = 11 : i64} {
  func.func @se_block_kernel(%arg0: i32, %arg1: memref<1x4x256xf32, #tpu.memory_space<vmem>>, %arg2: memref<4x8xf32, #tpu.memory_space<vmem>>, %arg3: memref<1x8xf32, #tpu.memory_space<vmem>>, %arg4: memref<8x4xf32, #tpu.memory_space<vmem>>, %arg5: memref<1x4xf32, #tpu.memory_space<vmem>>, %arg6: memref<1x4x256xf32, #tpu.memory_space<vmem>>) attributes {dimension_semantics = [#tpu.dimension_semantics<parallel>], iteration_bounds = array<i64: 2>, scalar_prefetch = 0 : i64, scratch_operands = 0 : i64, tpu.core_type = #tpu.core_type<tc>, window_params = [{transform_indices = @transform_0, window_bounds = array<i64: 1, 4, 256>}, {pipeline_mode = #tpu.pipeline_mode<synchronous>, transform_indices = @transform_1, window_bounds = array<i64: 4, 8>}, {pipeline_mode = #tpu.pipeline_mode<synchronous>, transform_indices = @transform_2, window_bounds = array<i64: 1, 8>}, {pipeline_mode = #tpu.pipeline_mode<synchronous>, transform_indices = @transform_3, window_bounds = array<i64: 8, 4>}, {pipeline_mode = #tpu.pipeline_mode<synchronous>, transform_indices = @transform_4, window_bounds = array<i64: 1, 4>}, {transform_indices = @transform_5, window_bounds = array<i64: 1, 4, 256>}]} {
    %c0 = arith.constant 0 : index
    %c0_0 = arith.constant 0 : index
    %c0_1 = arith.constant 0 : index
    %0 = vector.load %arg1[%c0, %c0_0, %c0_1] : memref<1x4x256xf32, #tpu.memory_space<vmem>>, vector<1x4x256xf32>
    %cst = arith.constant dense<0.000000e+00> : vector<1x4xf32>
    %1 = vector.multi_reduction <add>, %0, %cst [2] : vector<1x4x256xf32> to vector<1x4xf32>
    %cst_2 = arith.constant 3.906250e-03 : f32
    %2 = vector.broadcast %cst_2 : f32 to vector<1x4xf32>
    %3 = arith.mulf %1, %2 : vector<1x4xf32>
    %c0_3 = arith.constant 0 : index
    %c0_4 = arith.constant 0 : index
    %4 = vector.load %arg2[%c0_3, %c0_4] : memref<4x8xf32, #tpu.memory_space<vmem>>, vector<4x8xf32>
    %cst_5 = arith.constant dense<0.000000e+00> : vector<1x8xf32>
    %5 = tpu.matmul %3, %4, %cst_5 {dimension_numbers = #tpu.dot_dimension_numbers<[1], [0], [0], [1], [0, 0, 1, 1], [], []>} : vector<1x4xf32>, vector<4x8xf32>, vector<1x8xf32> -> vector<1x8xf32>
    %c0_6 = arith.constant 0 : index
    %c0_7 = arith.constant 0 : index
    %6 = vector.load %arg3[%c0_6, %c0_7] : memref<1x8xf32, #tpu.memory_space<vmem>>, vector<1x8xf32>
    %7 = arith.addf %5, %6 : vector<1x8xf32>
    %cst_8 = arith.constant 0.000000e+00 : f32
    %8 = vector.broadcast %cst_8 : f32 to vector<1x8xf32>
    %9 = arith.cmpf ogt, %7, %8 : vector<1x8xf32>
    %cst_9 = arith.constant 5.000000e-02 : f32
    %10 = vector.broadcast %cst_9 : f32 to vector<1x8xf32>
    %11 = arith.mulf %10, %7 : vector<1x8xf32>
    %12 = arith.select %9, %7, %11 : vector<1x8xi1>, vector<1x8xf32>
    %c0_10 = arith.constant 0 : index
    %c0_11 = arith.constant 0 : index
    %13 = vector.load %arg4[%c0_10, %c0_11] : memref<8x4xf32, #tpu.memory_space<vmem>>, vector<8x4xf32>
    %cst_12 = arith.constant dense<0.000000e+00> : vector<1x4xf32>
    %14 = tpu.matmul %12, %13, %cst_12 {dimension_numbers = #tpu.dot_dimension_numbers<[1], [0], [0], [1], [0, 0, 1, 1], [], []>} : vector<1x8xf32>, vector<8x4xf32>, vector<1x4xf32> -> vector<1x4xf32>
    %c0_13 = arith.constant 0 : index
    %c0_14 = arith.constant 0 : index
    %15 = vector.load %arg5[%c0_13, %c0_14] : memref<1x4xf32, #tpu.memory_space<vmem>>, vector<1x4xf32>
    %16 = arith.addf %14, %15 : vector<1x4xf32>
    %17 = arith.negf %16 : vector<1x4xf32>
    %18 = math.exp %17 : vector<1x4xf32>
    %cst_15 = arith.constant 1.000000e+00 : f32
    %19 = vector.broadcast %cst_15 : f32 to vector<1x4xf32>
    %20 = arith.addf %19, %18 : vector<1x4xf32>
    %21 = arith.divf %19, %20 : vector<1x4xf32>
    %22 = vector.shape_cast %21 : vector<1x4xf32> to vector<1x4x1xf32>
    %23 = vector.broadcast %22 : vector<1x4x1xf32> to vector<1x4x256xf32>
    %24 = arith.mulf %0, %23 : vector<1x4x256xf32>
    %c0_16 = arith.constant 0 : index
    %c0_17 = arith.constant 0 : index
    %c0_18 = arith.constant 0 : index
    %25 = vector.load %arg6[%c0_16, %c0_17, %c0_18] : memref<1x4x256xf32, #tpu.memory_space<vmem>>, vector<1x4x256xf32>
    tpu.vector_store %arg6[%c0_16, %c0_17, %c0_18], %24 {strides = array<i32>} : memref<1x4x256xf32, #tpu.memory_space<vmem>>, vector<1x4x256xf32>,
    return
  }
  func.func @transform_0(%arg0: i32) -> (i32, i32, i32) {
    %c0_i32 = arith.constant 0 : i32
    %c0_i32_0 = arith.constant 0 : i32
    %c0_i32_1 = arith.constant 0 : i32
    return %arg0, %c0_i32, %c0_i32_0 : i32, i32, i32
  }
  func.func @transform_1(%arg0: i32) -> (i32, i32) {
    %c0_i32 = arith.constant 0 : i32
    %c0_i32_0 = arith.constant 0 : i32
    %c0_i32_1 = arith.constant 0 : i32
    return %c0_i32, %c0_i32_0 : i32, i32
  }
  func.func @transform_2(%arg0: i32) -> (i32, i32) {
    %c0_i32 = arith.constant 0 : i32
    %c0_i32_0 = arith.constant 0 : i32
    %c0_i32_1 = arith.constant 0 : i32
    return %c0_i32, %c0_i32_0 : i32, i32
  }
  func.func @transform_3(%arg0: i32) -> (i32, i32) {
    %c0_i32 = arith.constant 0 : i32
    %c0_i32_0 = arith.constant 0 : i32
    %c0_i32_1 = arith.constant 0 : i32
    return %c0_i32, %c0_i32_0 : i32, i32
  }
  func.func @transform_4(%arg0: i32) -> (i32, i32) {
    %c0_i32 = arith.constant 0 : i32
    %c0_i32_0 = arith.constant 0 : i32
    %c0_i32_1 = arith.constant 0 : i32
    return %c0_i32, %c0_i32_0 : i32, i32
  }
  func.func @transform_5(%arg0: i32) -> (i32, i32, i32) {
    %c0_i32 = arith.constant 0 : i32
    %c0_i32_0 = arith.constant 0 : i32
    %c0_i32_1 = arith.constant 0 : i32
    return %arg0, %c0_i32, %c0_i32_0 : i32, i32, i32
  }
}

</mosaic_0001>

<bundles_post_ra>
// kernel: tpu_custom_call.1
= control target key start
LH: loop header
LB: loop body
LE: loop exit
PB: predicated region body
PF: predicated region fallthrough
CT: control target
= control target key end

     0   :  { %10 = vsyncpa [#allocation3], 0  ;;  %s787_s0 = inlined_call_operand.hbm [shape: f32[2,4,256], index: 0, kind: input, shape index: {}]   ;;  %s788_s1 = inlined_call_operand.vmem [shape: f32[4,8], index: 1, kind: input, shape index: {}]   ;;  %s789_s2 = inlined_call_operand.vmem [shape: f32[1,8], index: 2, kind: input, shape index: {}]   ;;  %s790_s3 = inlined_call_operand.vmem [shape: f32[8,4], index: 3, kind: input, shape index: {}]   ;;  %s791_s4 = inlined_call_operand.vmem [shape: f32[1,4], index: 4, kind: input, shape index: {}]   ;;  %s792_s5 = inlined_call_operand.hbm [shape: f32[2,4,256], index: 5, kind: output, shape index: {}]  }
   0x1   :  { %12 = vsyncpa [#allocation3 + $0x1], 0 }
   0x2   :  { %13 = vsyncpa [#allocation4], 0 }
   0x3   :  { %15 = vsyncpa [#allocation4 + $0x1], 0  ;;  %s640_s18 = smov 0   ;;  %s642_s19 = smov 0  }
   0x4   :  { %s644_s20 = smov 0   ;;  %s646_s21 = smov 0  }
   0x5 LB: > { %s661_s22 = sadd.s32 4294967295, %s607_s21   ;;  %s439_s23 = sadd.s32 4294967294, %s607_s21   ;;  %s607_s21 = sphi %s646_s21, %s802_s21   ;;  %s603_s20 = sphi %s644_s20, %s801_s20   ;;  %s599_s19 = sphi %s642_s19, %s800_s19   ;;  %s595_s18 = sphi %s640_s18, %s799_s18  }
   0x6   : > { %s665_s24 = sadd.s32 1, %s607_s21   ;;  %s28_s25 = sadd.s32 1, %s603_s20 }
   0x7   : > { %s25_s26 = ssub.s32 %s607_s21, %s665_s24  ;;  %p35_p0 = scmp.ne.s32.totalorder %s603_s20, %s599_s19 }
   0x8   : > { %p26_p1 = scmp.eq.s32.totalorder %s25_s26, 0  ;;  %p36_p2 = scmp.eq.s32.totalorder %s607_s21, 0 }
   0x9   : > { %p41_p3 = scmp.ne.s32.totalorder %s599_s19, %s595_s18  ;;  %p42_p4 = scmp.eq.s32.totalorder %s661_s22, 0 }
   0xa   : > { %s677_s27 = scalar_select %p26_p1, %s603_s20, %s28_s25  }
   0xb   : > { %p679_p5 = por %p36_p2, %p35_p0  ;;  %p683_p6 = por %p42_p4, %p41_p3 }
   0xc   : > { %p149_p7 = scmp.eq.s32.totalorder %s661_s22, 1  ;;  %p155_p8 = scmp.eq.s32.totalorder %s439_s23, 1 }
   0xd   : > { %p471_p10 = scmp.lt.s32.totalorder %s607_s21, 2  ;;  %s187_s7 = sand.u32 1, %s603_s20  }
   0xe   : > { %p690_p11 = por %p149_p7, %p35_p0  ;;  %p694_p12 = por %p155_p8, %p41_p3 }
   0xf   : > { %s457_s8 = sshll.u32 %s607_s21, 3  ;;  %s442_s9 = sshll.u32 %s187_s7, 3 }
  0x10   : > { %s196_s12 = scalar_lea.hbm %s787_s0, %s457_s8  ;;  %s191_s14 = scalar_lea.vmem [#allocation2], %s442_s9 }
  0x11   : > { %s198_s13 = sshll.u32 %s196_s12, 4  ;;  %s200_s15 = sshll.u32 %s191_s14, 4  ;;  %s199_s13 = int_to_ptr.hbm [resolvable:$true] %s198_s13  ;;  %s201_s15 = int_to_ptr.vmem [resolvable:$true] %s200_s15 }
  0x12   : > { %p705_p13 = pnand %p471_p10, %p679_p5  ;;  %p445_p0 = scmp.ge.s32.totalorder %s607_s21, 1 }
  0x13   : > { %p205_p1 = scmp.lt.s32.totalorder %s607_s21, 3  ;;  %s188_s17 = scalar_lea.sflag [#allocation3], %s187_s7 }
  0x14   : > { %s511_s23 = sshra.s32 %s199_s13, 4  ;;  %p515_p3 = pneg %p705_p13  ;;  %s512_s23 = int_to_ptr.hbm [resolvable:$true] %s511_s23 }
  0x15   : > { %s513_s25 = scalar_lea.hbm %s512_s23, 8  ;;  %s518_s28 = scalar_lea.hbm %s787_s0, 16 }
  0x16   : > { %p514_p2 = scmp.ne.s32.totalorder %s512_s23, %s513_s25  ;;  %p519_p5 = scmp.lt.s32.totalorder %s512_s23, %s787_s0 }
  0x17   : > { %p520_p8 = scmp.lt.s32.totalorder %s518_s28, %s513_s25 }
  0x18   : > { %p516_p4 = pnand %p515_p3, %p514_p2 }
  0x19   : > { %p521_p10 = por %p520_p8, %p519_p5 }
  0x1a   : > { %p517_p7 = pneg %p516_p4 }
  0x1c   : > { %p522_p9 = pnand %p521_p10, %p517_p7 }
  0x1e   : > { %525 = shalt.err (!%p522_p9)
}
  0x1f   : > { %466 = dma.hbm_to_vmem [thread:$0]  (!%p705_p13), %s199_s13, 128, %s201_s15, %s188_s17  }
  0x20   : > { %p206_p2 = pnand %p445_p0, %p205_p1 }
  0x21   : > { %s726_s7 = sand.u32 (!%p206_p2), 1, %s599_s19  }
  0x22   : > { %209 = sbr.rel (%p206_p2) target bundleno = 583 (0x247), region = 40  ;;  %s446_s11 = sshll.u32 (!%p206_p2), %s726_s7, 3 }
  0x23   : > { %s212_s12 = scalar_lea.sflag (!%p206_p2), [#allocation3], %s726_s7  ;;  %s215_s14 = scalar_lea.vmem (!%p206_p2), [#allocation2], %s446_s11 }
  0x27   : > { %586 = dma.done.wait (%p683_p6), %s212_s12, 128  }
  0x28   : > { %588 = vsyncadd (%p683_p6), %s212_s12, 4294967168  ;;  %v736_v0 = vld [vmem:[%s215_s14] sm:$0xff]  ;;  %vm250_vm0 = vcmask 1043456   ;;  %v257_v6 = vld [vmem:[%s788_s1] sm:$0xf]  ;;  %v260_v7 = vlaneseq  ;;  %vm263_vm1 = vcmask 31744  }
  0x29   : > { %245 = vst [vmem:[#allocation1] ss:$2 sm:$0xff] %v736_v0  ;;  %448 = vmatpush.msk.msra.mxu0 %vm250_vm0, %v257_v6  ;;  %v292_v12 = vld [vmem:[%s790_s3] sm:$0xff]  ;;  %vm294_vm3 = vcmask 64512   ;;  %v609_v36 = vmov 839922192  }
  0x2a   : > { %v261_v8 = vand.u32 127, %v260_v7  ;;  %313 = vmatpush.msra.mxu1 %v292_v12  ;;  %v258_v13 = vld [vmem:[%s789_s2] sm:$0x1]  ;;  %v339_v18 = vshrl.u32 %v260_v7, 7  ;;  %v346_v37 = vunpack.c.l.s4 %v609_v36  ;;  %s458_s8 = sshll.u32 %s661_s22, 3  ;;  %s242_s12 = scalar_lea.vmem [#allocation5], %s446_s11 }
  0x2b   : > { %v293_v19 = vld [vmem:[%s791_s4] sm:$0x1]  ;;  %s364_s10 = scalar_lea.hbm %s792_s5, %s458_s8  ;;  %s366_s14 = sshll.u32 %s242_s12, 4  ;;  %s367_s14 = int_to_ptr.vmem [resolvable:$true] %s366_s14 }
  0x2c   : > { %506 = vset.pattern.permute.xlu0 %v339_v18  ;;  %v347_v38 = vunpack.c.0.s8 %v346_v37  ;;  %s368_s13 = sshll.u32 %s364_s10, 4  ;;  %s353_s15 = scalar_lea.sflag [#allocation4], %s726_s7  ;;  %s369_s13 = int_to_ptr.hbm [resolvable:$true] %s368_s13 }
  0x2d   : > { %s555_s29 = sshra.s32 %s369_s13, 4  ;;  %s561_s11 = scalar_lea.hbm %s792_s5, 16  ;;  %s556_s29 = int_to_ptr.hbm [resolvable:$true] %s555_s29 }
  0x2e   : > { %s557_s22 = scalar_lea.hbm %s556_s29, 8  ;;  %p562_p0 = scmp.lt.s32.totalorder %s556_s29, %s792_s5 }
  0x2f   : > { %p558_p6 = scmp.ne.s32.totalorder %s556_s29, %s557_s22  ;;  %p563_p1 = scmp.lt.s32.totalorder %s561_s11, %s557_s22 }
  0x30   : > { %v246_v1 = vld.sshfl [vmem:[#allocation1] sm:$0xff pattern:$0x75316420]  ;;  %v247_v2 = vld.sshfl [vmem:[#allocation1 + $0x8] sm:$0xff pattern:$0x75316420] }
  0x31   : > { %v251_v3 = vsel %vm250_vm0, %v246_v1, 0.0  ;;  %v252_v4 = vsel %vm250_vm0, %v247_v2, 0.0  ;;  %p559_p9 = pnand %p558_p6, %p690_p11  ;;  %p564_p3 = por %p563_p1, %p562_p0 }
  0x32   : > { %v253_v5 = vadd.f32 %v252_v4, %v251_v3 }
  0x33   : > { %p560_p13 = pneg %p559_p9 }
  0x34   : > { %254 = vadd.xlane.f32.xlu0 %v253_v5 }
  0x35   : > { %p565_p4 = pnand %p564_p3, %p560_p13 }
  0xa7   : > { %v255_v9 = vpop.xlane.xlu0 %254 }
  0xa8   : > { %v256_v10 = vmul.f32 0.00390625, %v255_v9 }
  0xaa   : > { %v262_v11 = vperm.slane %v256_v10, %v261_v8 }
  0xac   : > { %449 = vmatmul.msk.f32.vlgmr.msra.gmra.mxu0 %vm263_vm1, %v262_v11 }
 0x129   : > { %v286_v14 = vpop.f32.mrf.mxu0 }
 0x12a   : > { %v287_v15 = vadd.f32 %v286_v14, %v258_v13 }
 0x12c   : > { %v290_v16 = vmul.f32 0.05, %v287_v15  ;;  %vm289_vm2 = vcmp.gt.f32.partialorder %v287_v15, 0.0 }
 0x12e   : > { %v291_v17 = vsel %vm289_vm2, %v287_v15, %v290_v16 }
 0x12f   : > { %450 = vmatmul.msk.f32.vlgmr.msra.gmra.mxu1 %vm294_vm3, %v291_v17 }
 0x1ac   : > { %v315_v20 = vpop.f32.mrf.mxu1 }
 0x1ad   : > { %v316_v21 = vadd.f32 %v315_v20, %v293_v19 }
 0x1af   : > { %v451_v22 = vmul.f32 -1.442695, %v316_v21 }
 0x1b1   : > { %507 = vpow2.f32 %v451_v22 }
 0x1b7   : > { %v508_v23 = vpop.eup %507 }
 0x1b8   : > { %v321_v24 = vadd.f32 1.0, %v508_v23 }
 0x1ba   : > { %509 = vrcp.f32 %v321_v24  ;;  %v333_v28 = vand.u32 2147483648, %v321_v24  ;;  %v331_v30 = vand.u32 2147483647, %v321_v24  ;;  %vm327_vm5 = vweird.f32 %v321_v24 }
 0x1bc   : > { %v334_v32 = vor.u32 1.1754944e-38, %v333_v28  ;;  %vm332_vm7 = vcmp.eq.f32.partialorder %v331_v30, 8.507059e+37 }
 0x1c0   : > { %v510_v25 = vpop.eup %509 }
 0x1c1   : > { %v323_v26 = vmul.f32 %v510_v25, %v321_v24  ;;  %vm328_vm4 = vweird.f32 %v510_v25 }
 0x1c2   : > { %vm329_vm6 = vmor %vm327_vm5, %vm328_vm4 }
 0x1c3   : > { %v324_v27 = vsub.f32 1.0, %v323_v26 }
 0x1c5   : > { %v325_v29 = vmul.f32 %v510_v25, %v324_v27 }
 0x1c7   : > { %v326_v31 = vadd.f32 %v510_v25, %v325_v29 }
 0x1c9   : > { %v330_v33 = vsel %vm329_vm6, %v510_v25, %v326_v31 }
 0x1ca   : > { %v335_v34 = vsel %vm332_vm7, %v334_v32, %v330_v33 }
 0x1cb   : > { %v337_v35 = vperm.slane %v335_v34, 0 }
 0x1cd   : > { %342 = vperm.xlu0 %506, %v337_v35  }
 0x23f   : > { %v343_v39 = vpop.permute.xlu0 %342 }
 0x240   : > { %v348_v40 = vperm.slane %v343_v39, %v347_v38 }
 0x242   : > { %v350_v41 = vmul.f32 %v348_v40, %v736_v0 }
 0x244   : > { %351 = vst [vmem:[%s242_s12] sm:$0xff] %v350_v41 }
 0x245   : > { %568 = shalt.err (!%p565_p4)
}
 0x246   : > { %461 = dma.vmem_to_hbm [thread:$0]  (%p690_p11), %s367_s14, 128, %s369_s13, %s353_s15  }
 0x247 PF: > { %s380_s7 = sand.u32 1, %s595_s18   ;;  %p798_p7 = scmp.ge.s32.totalorder %s607_s21, 2 }
 0x248   : > { %s381_s26 = scalar_lea.sflag [#allocation4], %s380_s7 }
 0x249   : > { %p468_p5 = pnand %p798_p7, %p694_p12 }
 0x24b   : > { %p469_p8 = pneg %p468_p5 }
 0x24d   : > { %590 = dma.done.wait (%p469_p8), %s381_s26, 128  }
 0x24e   : > { %592 = vsyncadd (%p469_p8), %s381_s26, 4294967168  ;;  %p18_p10 = scmp.ge.s32.totalorder %s665_s24, 4   ;;  %s799_s18 = smov %s599_s19 }
 0x24f   : > { %s800_s19 = smov %s603_s20  ;;  %s801_s20 = smov %s677_s27 }
 0x250   : > { %s802_s21 = smov %s665_s24  ;;  %20 = sbr.rel (!%p18_p10) target bundleno = 5 (0x5), region = 85 }
 0x255   :  { %387 = vsyncpa [#allocation3], 1 }
 0x256   :  { %389 = vsyncpa [#allocation3 + $0x1], 1 }
 0x257   :  { %390 = vsyncpa [#allocation4], 1 }
 0x258   :  { %392 = vsyncpa [#allocation4 + $0x1], 1 }

</bundles_post_ra>
